<compile_context>
chip_gen: v7x
topology: tpu7x:2x2x1
jax: 0.10.0
libtpu: 0.0.40
codegen_flags: <defaults>
</compile_context>

<pallas_src>
import jax
import jax.numpy as jnp
from jax.experimental import pallas as pl
from jax.experimental.pallas import tpu as pltpu  # noqa: F401  (TPU backend)

NEG_SLOPE = 0.01   # F.leaky_relu default negative_slope
LANE = 128         # vreg lane width: pad hidden channels up to this


def _leaky(x):
    return jnp.where(x > 0, x, NEG_SLOPE * x)


def gcn4_kernel(a_ref, x_ref,
                w0_ref, b0_ref,
                w1_ref, b1_ref,
                w2_ref, b2_ref,
                w3_ref, b3_ref,
                out_ref):
    """Whole forward pass in one kernel (everything fits in VMEM).

    a_ref : (N, N)       dense adjacency
    x_ref : (N, 1)       input node features (in_feats = 1)
    w0_ref: (1, P)       conv0 weight (in_feats=1 row), lane-padded     b0_ref: (1, P)
    w1_ref: (P, P)       conv1 weight, lane-padded                      b1_ref: (1, P)
    w2_ref: (P, P)       conv2 weight, lane-padded                      b2_ref: (1, P)
    w3_ref: (P, 1)       conv3 weight stored as a padded column          b3_ref: (1, 1)
    out_ref: (1, 1)      leaky_relu(conv3 output) for node 1 only
    """
    a = a_ref[...]
    x = x_ref[...]

    # --- conv0: in_feats = 1  ->  (A @ X) * w0_row  (outer-product form of X @ W0)
    agg0 = jnp.dot(a, x, preferred_element_type=jnp.float32)            # (N, 1)
    h = _leaky(agg0 * w0_ref[...] + b0_ref[...])                        # (N, P)

    # --- conv1
    agg1 = jnp.dot(a, h, preferred_element_type=jnp.float32)            # (N, P)
    h = _leaky(jnp.dot(agg1, w1_ref[...],
                       preferred_element_type=jnp.float32) + b1_ref[...])   # (N, P)

    # --- conv2
    agg2 = jnp.dot(a, h, preferred_element_type=jnp.float32)            # (N, P)
    h = _leaky(jnp.dot(agg2, w2_ref[...],
                       preferred_element_type=jnp.float32) + b2_ref[...])   # (N, P)

    # --- conv3: only node 1 of the output is needed, out_feats = 1.
    #     node1_out = (A[1, :] @ H) @ w3_col + b3   (associativity of (A@H)@W)
    a_row1 = a_ref[pl.ds(1, 1), :]                                       # (1, N)
    agg3 = jnp.dot(a_row1, h, preferred_element_type=jnp.float32)        # (1, P)
    z3 = jnp.dot(agg3, w3_ref[...],
                 preferred_element_type=jnp.float32) + b3_ref[...]       # (1, 1)
    out_ref[...] = _leaky(z3)


def _pad_to(arr, shape):
    pads = [(0, t - s) for s, t in zip(arr.shape, shape)]
    return jnp.pad(arr, pads)


def dummy_gcn4_forward(adj, x, params):
    """Returns h[1] (features of node 1 after the 4 GraphConv layers), shape (1,)."""
    w0, b0, w1, b1, w2, b2, w3, b3 = params   # w3 stored as (1, h3) row, b3 (1, 1)

    # Lane-pad hidden widths to the full 128-lane vreg width (zeros are exact:
    # padded channels stay identically zero through every layer).
    w0p = _pad_to(w0, (1, LANE))
    b0p = _pad_to(b0, (1, LANE))
    w1p = _pad_to(w1, (LANE, LANE))
    b1p = _pad_to(b1, (1, LANE))
    w2p = _pad_to(w2, (LANE, LANE))
    b2p = _pad_to(b2, (1, LANE))
    w3p = _pad_to(w3.T, (LANE, 1))            # conv3 weight as a padded column
    b3p = b3                                   # (1, 1)

    args = (adj, x, w0p, b0p, w1p, b1p, w2p, b2p, w3p, b3p)

    def full_spec(arr):
        nd = arr.ndim
        return pl.BlockSpec(arr.shape, lambda *_, _nd=nd: (0,) * _nd)

    out = pl.pallas_call(
        gcn4_kernel,
        out_shape=jax.ShapeDtypeStruct((1, 1), jnp.float32),
        in_specs=[full_spec(a) for a in args],
        out_specs=pl.BlockSpec((1, 1), lambda: (0, 0)),
    )(*args)
    return out[0]  # shape (1,), already node-1-only: matches `h = h[1]`


def _reference_forward(adj, x, params):
    """Pure-JAX reference (identical math, standard matmul form, unpadded)."""
    w0, b0, w1, b1, w2, b2, w3, b3 = params
    h = _leaky(adj @ x @ w0 + b0)            # w0: (1, h1)
    h = _leaky(adj @ h @ w1 + b1)
    h = _leaky(adj @ h @ w2 + b2)
    h = _leaky(adj @ h @ w3.T + b3)          # w3 stored as (1, h3) row
    return h[1]


if __name__ == "__main__":
    N, H1, H2, H3 = 16, 32, 16, 8

    key = jax.random.PRNGKey(0)
    k_adj, k_x, k0, k1, k2, k3 = jax.random.split(key, 6)

    # Deterministic synthetic graph + input features (in_feats = 1).
    adj = jax.random.bernoulli(k_adj, p=0.3, shape=(N, N)).astype(jnp.float32)
    x = jax.random.normal(k_x, (N, 1), dtype=jnp.float32)

    def init_layer(k, fan_in, fan_out):
        kw, _ = jax.random.split(k)
        scale = (6.0 / (fan_in + fan_out)) ** 0.5  # xavier-uniform-like, deterministic
        w = jax.random.uniform(kw, (fan_in, fan_out), jnp.float32, -scale, scale)
        b = jnp.zeros((1, fan_out), jnp.float32)
        return w, b

    w0, b0 = init_layer(k0, 1, H1)      # conv0: (1, h1)
    w1, b1 = init_layer(k1, H1, H2)     # conv1: (h1, h2)
    w2, b2 = init_layer(k2, H2, H3)     # conv2: (h2, h3)
    w3t, b3 = init_layer(k3, 1, H3)     # conv3 weight stored as (1, h3) row; bias (1, 1)
    b3 = b3[:, :1]

    params = (w0, b0, w1, b1, w2, b2, w3t, b3)

    out = dummy_gcn4_forward(adj, x, params)
    out = jax.block_until_ready(out)

    ref = _reference_forward(adj, x, params)
    assert out.shape == (1,), out.shape
    assert jnp.allclose(out, ref, atol=1e-4, rtol=1e-4), (out, ref)

    print("KERNEL_OK")
</pallas_src>

<mosaic_0001>
module attributes {stable_mosaic.version = 11 : i64} {
  func.func @gcn4_kernel(%arg0: memref<16x16xf32, #tpu.memory_space<vmem>>, %arg1: memref<16x1xf32, #tpu.memory_space<vmem>>, %arg2: memref<1x128xf32, #tpu.memory_space<vmem>>, %arg3: memref<1x128xf32, #tpu.memory_space<vmem>>, %arg4: memref<128x128xf32, #tpu.memory_space<vmem>>, %arg5: memref<1x128xf32, #tpu.memory_space<vmem>>, %arg6: memref<128x128xf32, #tpu.memory_space<vmem>>, %arg7: memref<1x128xf32, #tpu.memory_space<vmem>>, %arg8: memref<128x1xf32, #tpu.memory_space<vmem>>, %arg9: memref<1x1xf32, #tpu.memory_space<vmem>>, %arg10: memref<1x1xf32, #tpu.memory_space<vmem>>) attributes {dimension_semantics = [], scalar_prefetch = 0 : i64, scratch_operands = 0 : i64, tpu.core_type = #tpu.core_type<tc>} {
    %c0 = arith.constant 0 : index
    %c0_0 = arith.constant 0 : index
    %0 = vector.load %arg0[%c0, %c0_0] : memref<16x16xf32, #tpu.memory_space<vmem>>, vector<16x16xf32>
    %c0_1 = arith.constant 0 : index
    %c0_2 = arith.constant 0 : index
    %1 = vector.load %arg1[%c0_1, %c0_2] : memref<16x1xf32, #tpu.memory_space<vmem>>, vector<16x1xf32>
    %cst = arith.constant dense<0.000000e+00> : vector<16x1xf32>
    %2 = tpu.matmul %0, %1, %cst {dimension_numbers = #tpu.dot_dimension_numbers<[1], [0], [0], [1], [0, 0, 1, 1], [], []>} : vector<16x16xf32>, vector<16x1xf32>, vector<16x1xf32> -> vector<16x1xf32>
    %c0_3 = arith.constant 0 : index
    %c0_4 = arith.constant 0 : index
    %3 = vector.load %arg2[%c0_3, %c0_4] : memref<1x128xf32, #tpu.memory_space<vmem>>, vector<1x128xf32>
    %4 = vector.broadcast %2 : vector<16x1xf32> to vector<16x128xf32>
    %5 = vector.broadcast %3 : vector<1x128xf32> to vector<16x128xf32>
    %6 = arith.mulf %4, %5 : vector<16x128xf32>
    %c0_5 = arith.constant 0 : index
    %c0_6 = arith.constant 0 : index
    %7 = vector.load %arg3[%c0_5, %c0_6] : memref<1x128xf32, #tpu.memory_space<vmem>>, vector<1x128xf32>
    %8 = vector.broadcast %7 : vector<1x128xf32> to vector<16x128xf32>
    %9 = arith.addf %6, %8 : vector<16x128xf32>
    %cst_7 = arith.constant 0.000000e+00 : f32
    %10 = vector.broadcast %cst_7 : f32 to vector<16x128xf32>
    %11 = arith.cmpf ogt, %9, %10 : vector<16x128xf32>
    %cst_8 = arith.constant 0.00999999977 : f32
    %12 = vector.broadcast %cst_8 : f32 to vector<16x128xf32>
    %13 = arith.mulf %12, %9 : vector<16x128xf32>
    %14 = arith.select %11, %9, %13 : vector<16x128xi1>, vector<16x128xf32>
    %cst_9 = arith.constant dense<0.000000e+00> : vector<16x128xf32>
    %15 = tpu.matmul %0, %14, %cst_9 {dimension_numbers = #tpu.dot_dimension_numbers<[1], [0], [0], [1], [0, 0, 1, 1], [], []>} : vector<16x16xf32>, vector<16x128xf32>, vector<16x128xf32> -> vector<16x128xf32>
    %c0_10 = arith.constant 0 : index
    %c0_11 = arith.constant 0 : index
    %16 = vector.load %arg4[%c0_10, %c0_11] : memref<128x128xf32, #tpu.memory_space<vmem>>, vector<128x128xf32>
    %cst_12 = arith.constant dense<0.000000e+00> : vector<16x128xf32>
    %17 = tpu.matmul %15, %16, %cst_12 {dimension_numbers = #tpu.dot_dimension_numbers<[1], [0], [0], [1], [0, 0, 1, 1], [], []>} : vector<16x128xf32>, vector<128x128xf32>, vector<16x128xf32> -> vector<16x128xf32>
    %c0_13 = arith.constant 0 : index
    %c0_14 = arith.constant 0 : index
    %18 = vector.load %arg5[%c0_13, %c0_14] : memref<1x128xf32, #tpu.memory_space<vmem>>, vector<1x128xf32>
    %19 = vector.broadcast %18 : vector<1x128xf32> to vector<16x128xf32>
    %20 = arith.addf %17, %19 : vector<16x128xf32>
    %cst_15 = arith.constant 0.000000e+00 : f32
    %21 = vector.broadcast %cst_15 : f32 to vector<16x128xf32>
    %22 = arith.cmpf ogt, %20, %21 : vector<16x128xf32>
    %cst_16 = arith.constant 0.00999999977 : f32
    %23 = vector.broadcast %cst_16 : f32 to vector<16x128xf32>
    %24 = arith.mulf %23, %20 : vector<16x128xf32>
    %25 = arith.select %22, %20, %24 : vector<16x128xi1>, vector<16x128xf32>
    %cst_17 = arith.constant dense<0.000000e+00> : vector<16x128xf32>
    %26 = tpu.matmul %0, %25, %cst_17 {dimension_numbers = #tpu.dot_dimension_numbers<[1], [0], [0], [1], [0, 0, 1, 1], [], []>} : vector<16x16xf32>, vector<16x128xf32>, vector<16x128xf32> -> vector<16x128xf32>
    %c0_18 = arith.constant 0 : index
    %c0_19 = arith.constant 0 : index
    %27 = vector.load %arg6[%c0_18, %c0_19] : memref<128x128xf32, #tpu.memory_space<vmem>>, vector<128x128xf32>
    %cst_20 = arith.constant dense<0.000000e+00> : vector<16x128xf32>
    %28 = tpu.matmul %26, %27, %cst_20 {dimension_numbers = #tpu.dot_dimension_numbers<[1], [0], [0], [1], [0, 0, 1, 1], [], []>} : vector<16x128xf32>, vector<128x128xf32>, vector<16x128xf32> -> vector<16x128xf32>
    %c0_21 = arith.constant 0 : index
    %c0_22 = arith.constant 0 : index
    %29 = vector.load %arg7[%c0_21, %c0_22] : memref<1x128xf32, #tpu.memory_space<vmem>>, vector<1x128xf32>
    %30 = vector.broadcast %29 : vector<1x128xf32> to vector<16x128xf32>
    %31 = arith.addf %28, %30 : vector<16x128xf32>
    %cst_23 = arith.constant 0.000000e+00 : f32
    %32 = vector.broadcast %cst_23 : f32 to vector<16x128xf32>
    %33 = arith.cmpf ogt, %31, %32 : vector<16x128xf32>
    %cst_24 = arith.constant 0.00999999977 : f32
    %34 = vector.broadcast %cst_24 : f32 to vector<16x128xf32>
    %35 = arith.mulf %34, %31 : vector<16x128xf32>
    %36 = arith.select %33, %31, %35 : vector<16x128xi1>, vector<16x128xf32>
    %c1 = arith.constant 1 : index
    %c0_25 = arith.constant 0 : index
    %37 = vector.load %arg0[%c1, %c0_25] : memref<16x16xf32, #tpu.memory_space<vmem>>, vector<1x16xf32>
    %cst_26 = arith.constant dense<0.000000e+00> : vector<1x128xf32>
    %38 = tpu.matmul %37, %36, %cst_26 {dimension_numbers = #tpu.dot_dimension_numbers<[1], [0], [0], [1], [0, 0, 1, 1], [], []>} : vector<1x16xf32>, vector<16x128xf32>, vector<1x128xf32> -> vector<1x128xf32>
    %c0_27 = arith.constant 0 : index
    %c0_28 = arith.constant 0 : index
    %39 = vector.load %arg8[%c0_27, %c0_28] : memref<128x1xf32, #tpu.memory_space<vmem>>, vector<128x1xf32>
    %cst_29 = arith.constant dense<0.000000e+00> : vector<1x1xf32>
    %40 = tpu.matmul %38, %39, %cst_29 {dimension_numbers = #tpu.dot_dimension_numbers<[1], [0], [0], [1], [0, 0, 1, 1], [], []>} : vector<1x128xf32>, vector<128x1xf32>, vector<1x1xf32> -> vector<1x1xf32>
    %c0_30 = arith.constant 0 : index
    %c0_31 = arith.constant 0 : index
    %41 = vector.load %arg9[%c0_30, %c0_31] : memref<1x1xf32, #tpu.memory_space<vmem>>, vector<1x1xf32>
    %42 = arith.addf %40, %41 : vector<1x1xf32>
    %cst_32 = arith.constant 0.000000e+00 : f32
    %43 = vector.broadcast %cst_32 : f32 to vector<1x1xf32>
    %44 = arith.cmpf ogt, %42, %43 : vector<1x1xf32>
    %cst_33 = arith.constant 0.00999999977 : f32
    %45 = vector.broadcast %cst_33 : f32 to vector<1x1xf32>
    %46 = arith.mulf %45, %42 : vector<1x1xf32>
    %47 = arith.select %44, %42, %46 : vector<1x1xi1>, vector<1x1xf32>
    %c0_34 = arith.constant 0 : index
    %c0_35 = arith.constant 0 : index
    %48 = vector.load %arg10[%c0_34, %c0_35] : memref<1x1xf32, #tpu.memory_space<vmem>>, vector<1x1xf32>
    tpu.vector_store %arg10[%c0_34, %c0_35], %47 {strides = array<i32>} : memref<1x1xf32, #tpu.memory_space<vmem>>, vector<1x1xf32>,
    return
  }
}

</mosaic_0001>

<bundles_post_ra>
// kernel: tpu_custom_call.1
= control target key start
LH: loop header
LB: loop body
LE: loop exit
PB: predicated region body
PF: predicated region fallthrough
CT: control target
= control target key end

     0   :  { %s1313_s0 = inlined_call_operand.vmem [shape: f32[16,16], index: 0, kind: input, shape index: {}]   ;;  %s1314_s1 = inlined_call_operand.vmem [shape: f32[16,1], index: 1, kind: input, shape index: {}]   ;;  %s1315_s2 = inlined_call_operand.vmem [shape: f32[1,128], index: 2, kind: input, shape index: {}]   ;;  %s1316_s3 = inlined_call_operand.vmem [shape: f32[1,128], index: 3, kind: input, shape index: {}]   ;;  %s1317_s4 = inlined_call_operand.vmem [shape: f32[128,128], index: 4, kind: input, shape index: {}]   ;;  %s1318_s5 = inlined_call_operand.vmem [shape: f32[1,128], index: 5, kind: input, shape index: {}]   ;;  %s1319_s6 = inlined_call_operand.hbm [shape: f32[128,128], index: 6, kind: input, shape index: {}]   ;;  %s1320_s7 = inlined_call_operand.vmem [shape: f32[1,128], index: 7, kind: input, shape index: {}]   ;;  %s1321_s8 = inlined_call_operand.vmem [shape: f32[128,1], index: 8, kind: input, shape index: {}]   ;;  %s1322_s9 = inlined_call_operand.<no memory space> [shape: f32[1,1], index: 9, kind: input, shape index: {}]   ;;  %s1323_s10 = inlined_call_operand.hbm [shape: f32[1,1], index: 10, kind: output, shape index: {}]  }
   0x1   :  { %v15_v0 = vstv %s1322_s9 }
   0x2   :  { %16 = vst [vmem:[#allocation2] sm:$0x1] %v15_v0 }
   0x3   :  { %17 = vsyncpa [#allocation4], 0 }
   0x4   :  { %18 = vsyncpa [#allocation5], 0  ;;  %s1083_s15 = smov [#allocation3]   ;;  %s1035_s19 = scalar_lea.hbm %s1319_s6, 2048 }
   0x5   :  { %s36_s16 = sshll.u32 %s1083_s15, 4  ;;  %p1036_p0 = scmp.ne.s32.totalorder %s1319_s6, %s1035_s19  ;;  %s37_s16 = int_to_ptr.vmem [resolvable:$true] %s36_s16 }
   0x6   :  { %p1039_p1 = scmp.lt.u32.totalorder %s1035_s19, %s1319_s6 }
   0x8   :  { %p1041_p2 = pnand %p1039_p1, %p1036_p0 }
   0xa   :  { %1044 = shalt.err (!%p1041_p2)
}
   0xb   :  { %s1045_s9 = scalar_lea.vmem %s37_s16, 2048  ;;  %p1050_p4 = scmp.lt.s32.totalorder %s37_s16, %s37_s16 }
   0xc   :  { %p1046_p3 = scmp.ne.s32.totalorder %s37_s16, %s1045_s9  ;;  %p1051_p5 = scmp.lt.s32.totalorder %s1045_s9, %s1045_s9 }
   0xe   :  { %p1052_p6 = por %p1051_p5, %p1050_p4 }
  0x10   :  { %p1053_p7 = pnand %p1052_p6, %p1046_p3 }
  0x12   :  { %1056 = shalt.err (!%p1053_p7)
}
  0x13   :  { %s1084_s24 = smov 128   ;;  %s1085_s25 = smov 8  }
  0x14   :  { %42 = dma.hbm_to_vmem [thread:$0]  %s1319_s6, 2048, %s37_s16, [#allocation4], %s1084_s24, %s1084_s24, %s1085_s25  }
  0x15   :  { %1079 = dma.done.wait [#allocation4], 2048  }
  0x16   :  { %1080 = vsyncadd [#allocation4], 4294965248  ;;  %vm56_vm0 = vcmask 130048   ;;  %v54_v1 = vld [vmem:[%s1314_s1] sm:$0xff]  ;;  %v55_v2 = vld [vmem:[%s1314_s1 + $0x8] sm:$0xff]  ;;  %v1086_v6 = vmov 0  }
  0x17   :  { %v1170_v3 = vld [vmem:[%s1313_s0] sm:$0xff]  ;;  %v923_v4 = vpack.c.bf16 %v55_v2, %v54_v1  ;;  %v1177_v5 = vld [vmem:[%s1313_s0 + $0x8] sm:$0xff]  ;;  %1034 = vset.pattern.permute.xlu0 %v1086_v6  ;;  %v249_v11 = vld [vmem:[%s1317_s4 + $0x10] sm:$0xff]  ;;  %vm1088_vm5 = vmmov 0   ;;  %vm694_vm9 = vcmask 0  }
  0x18   :  { %794 = vmatprep.mubr.msk.f32.mxu1 %vm56_vm0, %v1170_v3  ;;  %v247_v9 = vld [vmem:[%s1317_s4] sm:$0xff]  ;;  %v248_v10 = vld [vmem:[%s1317_s4 + $0x8] sm:$0xff]  ;;  %v250_v13 = vld [vmem:[%s1317_s4 + $0x18] sm:$0xff] }
  0x19   :  { %924 = vmatprep.subr.bf16.mxu1 %v923_v4  ;;  %v931_v12 = vpack.c.bf16 %v248_v10, %v247_v9  ;;  %v935_v14 = vpack.c.bf16 %v250_v13, %v249_v11  ;;  %v251_v15 = vld [vmem:[%s1317_s4 + $0x20] sm:$0xff]  ;;  %v252_v16 = vld [vmem:[%s1317_s4 + $0x28] sm:$0xff]  ;;  %v253_v18 = vld [vmem:[%s1317_s4 + $0x30] sm:$0xff] }
  0x1a   :  { %926 = vmatpush3.bf16.msra.mxu1 %v923_v4  ;;  %v939_v17 = vpack.c.bf16 %v252_v16, %v251_v15  ;;  %v254_v19 = vld [vmem:[%s1317_s4 + $0x38] sm:$0xff]  ;;  %v255_v21 = vld [vmem:[%s1317_s4 + $0x40] sm:$0xff]  ;;  %v256_v22 = vld [vmem:[%s1317_s4 + $0x48] sm:$0xff] }
  0x1b   :  { %932 = vmatprep.subr.bf16.mxu0 %v931_v12  ;;  %v943_v20 = vpack.c.bf16 %v254_v19, %v253_v18  ;;  %v947_v23 = vpack.c.bf16 %v256_v22, %v255_v21  ;;  %v257_v24 = vld [vmem:[%s1317_s4 + $0x50] sm:$0xff]  ;;  %v258_v25 = vld [vmem:[%s1317_s4 + $0x58] sm:$0xff]  ;;  %v259_v27 = vld [vmem:[%s1317_s4 + $0x60] sm:$0xff]  ;;  %v1089_v21 = vmov 0.0  }
  0x1c   :  { %934 = vmatpush3.bf16.msra.mxu0 %v931_v12  ;;  %v951_v26 = vpack.c.bf16 %v258_v25, %v257_v24  ;;  %v260_v28 = vld [vmem:[%s1317_s4 + $0x68] sm:$0xff]  ;;  %v261_v30 = vld [vmem:[%s1317_s4 + $0x70] sm:$0xff]  ;;  %v262_v31 = vld [vmem:[%s1317_s4 + $0x78] sm:$0xff] }
  0x1d   :  { %795 = vmatmul.mubr.msk.f32.vlgmr.msra.gmra.mrb[0].mxu1 %vm56_vm0, %v1177_v5  ;;  %936 = vmatprep.subr.bf16.mxu0 %v935_v14  ;;  %v955_v29 = vpack.c.bf16 %v260_v28, %v259_v27  ;;  %v959_v32 = vpack.c.bf16 %v262_v31, %v261_v30  ;;  %v713_v33 = vld [vmem:[%s1315_s2] ss:$0 sm:$0xff]  ;;  %v426_v55 = vld [vmem:[#allocation3] sm:$0xff]  ;;  %v427_v56 = vld [vmem:[#allocation3 + $0x8] sm:$0xff] }
  0x1e   :  { %801 = vmatprep.mubr.msk.f32.mxu1 %vm56_vm0, %v1170_v3  ;;  %v714_v34 = vld [vmem:[%s1316_s3] ss:$0 sm:$0xff]  ;;  %v967_v60 = vpack.c.bf16 %v427_v56, %v426_v55  ;;  %v428_v61 = vld [vmem:[#allocation3 + $0x10] sm:$0xff]  ;;  %v430_v0 = vld [vmem:[#allocation3 + $0x20] sm:$0xff] }
  0x1f   :  { %v717_v48 = vld [vmem:[%s1318_s5] ss:$0 sm:$0xff]  ;;  %v431_v1 = vld [vmem:[#allocation3 + $0x28] sm:$0xff]  ;;  %v436_v10 = vld [vmem:[#allocation3 + $0x50] sm:$0xff] }
  0x20   :  { %938 = vmatpush3.bf16.msra.mxu0 %v935_v14  ;;  %v429_v62 = vld [vmem:[#allocation3 + $0x18] sm:$0xff]  ;;  %v975_v2 = vpack.c.bf16 %v431_v1, %v430_v0  ;;  %v438_v13 = vld [vmem:[#allocation3 + $0x60] sm:$0xff]  ;;  %v440_v15 = vld [vmem:[#allocation3 + $0x70] sm:$0xff] }
  0x21   :  { %940 = vmatprep.subr.bf16.mxu0 %v939_v17  ;;  %v971_v63 = vpack.c.bf16 %v429_v62, %v428_v61  ;;  %v433_v4 = vld [vmem:[#allocation3 + $0x38] sm:$0xff]  ;;  %v606_v24 = vld [vmem:[%s1321_s8 + $0x10] sm:$0xff]  ;;  %v530_v56 = vld [vmem:[%s1313_s0 + $0x1] sm:$0x1] }
  0x22   :  { %v437_v11 = vld [vmem:[#allocation3 + $0x58] sm:$0xff]  ;;  %v610_v31 = vld [vmem:[%s1321_s8 + $0x30] sm:$0xff] }
  0x23   :  { %v987_v12 = vpack.c.bf16 %v437_v11, %v436_v10  ;;  %v441_v16 = vld [vmem:[#allocation3 + $0x78] sm:$0xff] }
  0x24   :  { %942 = vmatpush3.bf16.msra.mxu0 %v939_v17  ;;  %v995_v17 = vpack.c.bf16 %v441_v16, %v440_v15  ;;  %v604_v22 = vld [vmem:[%s1321_s8] sm:$0xff] }
  0x25   :  { %944 = vmatprep.subr.bf16.mxu0 %v943_v20  ;;  %v608_v28 = vld [vmem:[%s1321_s8 + $0x20] sm:$0xff] }
  0x28   :  { %946 = vmatpush3.bf16.msra.mxu0 %v943_v20  ;;  %v1087_v20 = vmov 0.0|0.0  }
  0x29   :  { %948 = vmatprep.subr.bf16.mxu0 %v947_v23 }
  0x2c   :  { %950 = vmatpush3.bf16.msra.mxu0 %v947_v23  ;;  %v605_v23 = vld [vmem:[%s1321_s8 + $0x8] sm:$0xff] }
  0x2d   :  { %952 = vmatprep.subr.bf16.mxu0 %v951_v26  ;;  %v1003_v25 = vpack.c.bf16 %v605_v23, %v604_v22 }
  0x30   :  { %954 = vmatpush3.bf16.msra.mxu0 %v951_v26  ;;  %v607_v26 = vld [vmem:[%s1321_s8 + $0x18] sm:$0xff] }
  0x31   :  { %956 = vmatprep.subr.bf16.mxu0 %v955_v29  ;;  %v1006_v27 = vpack.c.bf16 %v607_v26, %v606_v24 }
  0x34   :  { %958 = vmatpush3.bf16.msra.mxu0 %v955_v29  ;;  %v609_v29 = vld [vmem:[%s1321_s8 + $0x28] sm:$0xff] }
  0x35   :  { %960 = vmatprep.subr.bf16.mxu0 %v959_v32  ;;  %v1009_v30 = vpack.c.bf16 %v609_v29, %v608_v28 }
  0x38   :  { %962 = vmatpush3.bf16.msra.mxu0 %v959_v32  ;;  %v611_v32 = vld [vmem:[%s1321_s8 + $0x38] sm:$0xff] }
  0x39   :  { %1002 = vmatprep.subr.bf16.mxu0 %v1087_v20 }
  0xf0   :  { %v796_v7 = vpop.f32.mrb[0].mxu1 }
  0xf1   :  { %v129_v8 = vpop.f32.mrb[1].mxu1 }
  0xf2   :  { %141 = vperm.xlu0 %1034, %v129_v8   ;;  %v435_v8 = vld [vmem:[#allocation3 + $0x48] sm:$0xff] }
  0xf6   :  { %146 = vperm.xlu0 %1034, %v796_v7   ;;  %v434_v7 = vld [vmem:[#allocation3 + $0x40] sm:$0xff] }
  0xf7   :  { %v983_v9 = vpack.c.bf16 %v435_v8, %v434_v7 }
 0x171   :  { %v142_v35 = vpop.permute.xlu0 %141 }
 0x172   :  { %v155_v36 = vmul.f32 %v713_v33, %v142_v35  ;;  %v613_v35 = vld [vmem:[%s1321_s8 + $0x48] sm:$0xff] }
 0x174   :  { %v164_v37 = vadd.f32 %v714_v34, %v155_v36 }
 0x175   :  { %v147_v38 = vpop.permute.xlu0 %146 }
 0x176   :  { %v156_v39 = vmul.f32 %v713_v33, %v147_v38  ;;  %v168_v40 = vmul.f32 0.01, %v164_v37  ;;  %vm166_vm1 = vcmp.gt.f32.partialorder %v164_v37, 0.0  ;;  %v1012_v33 = vpack.c.bf16 %v611_v32, %v610_v31  ;;  %v615_v38 = vld [vmem:[%s1321_s8 + $0x58] sm:$0xff] }
 0x178   :  { %v165_v41 = vadd.f32 %v714_v34, %v156_v39  ;;  %v170_v43 = vsel %vm166_vm1, %v164_v37, %v168_v40  ;;  %v612_v34 = vld [vmem:[%s1321_s8 + $0x40] sm:$0xff]  ;;  %v614_v37 = vld [vmem:[%s1321_s8 + $0x50] sm:$0xff] }
 0x179   :  { %v1015_v36 = vpack.c.bf16 %v613_v35, %v612_v34  ;;  %v1018_v39 = vpack.c.bf16 %v615_v38, %v614_v37  ;;  %v616_v40 = vld [vmem:[%s1321_s8 + $0x60] sm:$0xff] }
 0x17a   :  { %vm167_vm2 = vcmp.gt.f32.partialorder %v165_v41, 0.0  ;;  %v169_v42 = vmul.f32 0.01, %v165_v41 }
 0x17c   :  { %v171_v44 = vsel %vm167_vm2, %v165_v41, %v169_v42  ;;  %v617_v41 = vld [vmem:[%s1321_s8 + $0x68] sm:$0xff] }
 0x17d   :  { %v927_v45 = vpack.c.bf16 %v171_v44, %v170_v43  ;;  %v1021_v42 = vpack.c.bf16 %v617_v41, %v616_v40  ;;  %v618_v43 = vld [vmem:[%s1321_s8 + $0x70] sm:$0xff]  ;;  %v619_v44 = vld [vmem:[%s1321_s8 + $0x78] sm:$0xff] }
 0x17f   :  { %928 = vmatprep.subr.bf16.mxu1 %v927_v45 }
 0x180   :  { %930 = vmatpush3.bf16.msra.mxu1 %v927_v45  ;;  %v1024_v45 = vpack.c.bf16 %v619_v44, %v618_v43 }
 0x183   :  { %802 = vmatmul.mubr.msk.f32.vlgmr.msra.gmra.mrb[2].mxu1 %vm56_vm0, %v1177_v5 }
 0x184   :  { %843 = vmatprep.mubr.msk.f32.mxu1 %vm56_vm0, %v1170_v3  ;;  %v432_v3 = vld [vmem:[#allocation3 + $0x30] sm:$0xff] }
 0x185   :  { %v979_v6 = vpack.c.bf16 %v433_v4, %v432_v3 }
 0x256   :  { %v803_v46 = vpop.f32.mrb[2].mxu1 }
 0x257   :  { %v238_v47 = vpop.f32.mrb[3].mxu1 }
 0x258   :  { %836 = vmatprep.mubr.f32.mxu0 %v238_v47 }
 0x259   :  { %837 = vmatmul.mubr.f32.vlgmr.msra.gmra.mrb[0].mxu0 %v803_v46  ;;  %v720_v46 = vld [vmem:[%s1320_s7] ss:$0 sm:$0xff]  ;;  %s1090_s7 = smov [#allocation6]  }
 0x25a   :  { %920 = vmatprep.mubr.msk.f32.mxu0 %vm1088_vm5, %v1089_v21  ;;  %1004 = vmatpush3.bf16.msra.mxu0 %v1003_v25  ;;  %s702_s12 = sshll.u32 %s1090_s7, 4  ;;  %s703_s12 = int_to_ptr.vmem [resolvable:$true] %s702_s12 }
 0x25b   :  { %1005 = vmatprep.subr.bf16.mxu0 %v1087_v20  ;;  %s1057_s13 = scalar_lea.vmem %s703_s12, 16  ;;  %s1061_s0 = scalar_lea.vmem %s703_s12, 32 }
 0x25c   :  { %p1058_p8 = scmp.ne.s32.totalorder %s703_s12, %s1057_s13  ;;  %p1062_p9 = scmp.lt.s32.totalorder %s703_s12, %s703_s12 }
 0x25d   :  { %p1063_p10 = scmp.lt.s32.totalorder %s1061_s0, %s1057_s13 }
 0x25e   :  { %1007 = vmatpush3.bf16.msra.mxu0 %v1006_v27 }
 0x25f   :  { %1008 = vmatprep.subr.bf16.mxu0 %v1087_v20  ;;  %p1064_p11 = por %p1063_p10, %p1062_p9 }
 0x261   :  { %p1065_p12 = pnand %p1064_p11, %p1058_p8 }
 0x262   :  { %1010 = vmatpush3.bf16.msra.mxu0 %v1009_v30 }
 0x263   :  { %1011 = vmatprep.subr.bf16.mxu0 %v1087_v20 }
 0x266   :  { %1013 = vmatpush3.bf16.msra.mxu0 %v1012_v33 }
 0x267   :  { %1014 = vmatprep.subr.bf16.mxu0 %v1087_v20 }
 0x26a   :  { %1016 = vmatpush3.bf16.msra.mxu0 %v1015_v36 }
 0x26b   :  { %1017 = vmatprep.subr.bf16.mxu0 %v1087_v20 }
 0x26e   :  { %1019 = vmatpush3.bf16.msra.mxu0 %v1018_v39 }
 0x26f   :  { %1020 = vmatprep.subr.bf16.mxu0 %v1087_v20 }
 0x272   :  { %1022 = vmatpush3.bf16.msra.mxu0 %v1021_v42 }
 0x273   :  { %1023 = vmatprep.subr.bf16.mxu0 %v1087_v20 }
 0x276   :  { %1025 = vmatpush3.bf16.msra.mxu0 %v1024_v45 }
 0x32c   :  { %v838_v49 = vpop.f32.mrb[0].mxu0 }
 0x32d   :  { %v342_v50 = vadd.f32 %v838_v49, %v717_v48  ;;  %v336_v51 = vpop.f32.mrb[1].mxu0 }
 0x32e   :  { %v337_v52 = vadd.f32 %v717_v48, %v336_v51 }
 0x32f   :  { %vm346_vm3 = vcmp.gt.f32.partialorder %v342_v50, 0.0  ;;  %v348_v53 = vmul.f32 0.01, %v342_v50 }
 0x330   :  { %vm345_vm4 = vcmp.gt.f32.partialorder %v337_v52, 0.0  ;;  %v347_v54 = vmul.f32 0.01, %v337_v52 }
 0x331   :  { %v350_v57 = vsel %vm346_vm3, %v342_v50, %v348_v53 }
 0x332   :  { %v349_v58 = vsel %vm345_vm4, %v337_v52, %v347_v54 }
 0x333   :  { %v963_v59 = vpack.c.bf16 %v350_v57, %v349_v58 }
 0x335   :  { %964 = vmatprep.subr.bf16.mxu1 %v963_v59 }
 0x336   :  { %966 = vmatpush3.bf16.msra.mxu1 %v963_v59  ;;  %v620_v59 = vld [vmem:[#allocation2] sm:$0x1] }
 0x337   :  { %968 = vmatprep.subr.bf16.mxu1 %v967_v60 }
 0x339   :  { %844 = vmatmul.mubr.msk.f32.vlgmr.msra.gmra.mrb[4].mxu1 %vm56_vm0, %v1177_v5  ;;  %v439_v5 = vld [vmem:[#allocation3 + $0x68] sm:$0xff] }
 0x33a   :  { %970 = vmatpush3.bf16.msra.mxu1 %v967_v60  ;;  %v991_v14 = vpack.c.bf16 %v439_v5, %v438_v13 }
 0x33b   :  { %972 = vmatprep.subr.bf16.mxu1 %v971_v63 }
 0x33e   :  { %974 = vmatpush3.bf16.msra.mxu1 %v971_v63 }
 0x33f   :  { %976 = vmatprep.subr.bf16.mxu1 %v975_v2 }
 0x342   :  { %978 = vmatpush3.bf16.msra.mxu1 %v975_v2 }
 0x343   :  { %980 = vmatprep.subr.bf16.mxu1 %v979_v6 }
 0x346   :  { %982 = vmatpush3.bf16.msra.mxu1 %v979_v6 }
 0x347   :  { %984 = vmatprep.subr.bf16.mxu1 %v983_v9 }
 0x34a   :  { %986 = vmatpush3.bf16.msra.mxu1 %v983_v9 }
 0x34b   :  { %988 = vmatprep.subr.bf16.mxu1 %v987_v12 }
 0x34e   :  { %990 = vmatpush3.bf16.msra.mxu1 %v987_v12 }
 0x34f   :  { %992 = vmatprep.subr.bf16.mxu1 %v991_v14 }
 0x352   :  { %994 = vmatpush3.bf16.msra.mxu1 %v991_v14 }
 0x353   :  { %996 = vmatprep.subr.bf16.mxu1 %v995_v17 }
 0x356   :  { %998 = vmatpush3.bf16.msra.mxu1 %v995_v17 }
 0x357   :  { %999 = vmatprep.subr.bf16.mxu1 %v1087_v20 }
 0x40c   :  { %v845_v18 = vpop.f32.mrb[4].mxu1 }
 0x40d   :  { %v417_v19 = vpop.f32.mrb[5].mxu1 }
 0x40e   :  { %878 = vmatprep.mubr.f32.mxu1 %v417_v19 }
 0x40f   :  { %879 = vmatmul.mubr.f32.vlgmr.msra.gmra.mrb[6].mxu1 %v845_v18 }
 0x410   :  { %885 = vmatprep.mubr.msk.f32.mxu1 %vm1088_vm5, %v1089_v21 }
 0x4e2   :  { %v880_v47 = vpop.f32.mrb[6].mxu1 }
 0x4e3   :  { %v521_v48 = vadd.f32 %v880_v47, %v720_v46  ;;  %v515_v49 = vpop.f32.mrb[7].mxu1 }
 0x4e4   :  { %v516_v50 = vadd.f32 %v720_v46, %v515_v49 }
 0x4e5   :  { %vm525_vm6 = vcmp.gt.f32.partialorder %v521_v48, 0.0  ;;  %v527_v51 = vmul.f32 0.01, %v521_v48 }
 0x4e6   :  { %vm524_vm7 = vcmp.gt.f32.partialorder %v516_v50, 0.0  ;;  %v526_v52 = vmul.f32 0.01, %v516_v50 }
 0x4e7   :  { %v529_v53 = vsel %vm525_vm6, %v521_v48, %v527_v51 }
 0x4e8   :  { %v528_v54 = vsel %vm524_vm7, %v516_v50, %v526_v52 }
 0x4e9   :  { %v1000_v55 = vpack.c.bf16 %v529_v53, %v528_v54 }
 0x4eb   :  { %1001 = vmatpush3.bf16.msra.mxu1 %v1000_v55 }
 0x4ee   :  { %886 = vmatmul.mubr.msk.f32.vlgmr.msra.gmra.mrb[8].mxu1 %vm56_vm0, %v530_v56 }
 0x5c1   :  { %v600_v57 = vpop.f32.mrb[8].mxu1 }
 0x5c2   :  { %v887_v58 = vpop.f32.mrb[9].mxu1  ;;  %921 = vmatmul.mubr.f32.vlgmr.msra.gmra.mrb[2].mxu0 %v600_v57 }
 0x695   :  { %v687_v60 = vpop.f32.mrb[2].mxu0 }
 0x696   :  { %v688_v61 = vadd.f32 %v687_v60, %v620_v59  ;;  %v922_v62 = vpop.f32.mrb[3].mxu0 }
 0x698   :  { %vm691_vm8 = vcmp.gt.f32.partialorder %v688_v61, 0.0  ;;  %v692_v63 = vmul.f32 0.01, %v688_v61 }
 0x69a   :  { %v693_v0 = vsel %vm691_vm8, %v688_v61, %v692_v63 }
 0x69b   :  { %695 = vst.msk [vmem:[#allocation6] sm:$0x1] %vm694_vm9, %v693_v0 }
 0x69c   :  { %1068 = shalt.err (!%p1065_p12)
}
 0x69d   :  { %s1069_s1 = scalar_lea.hbm %s1323_s10, 16 }
 0x69e   :  { %p1070_p13 = scmp.ne.s32.totalorder %s1323_s10, %s1069_s1  ;;  %p1073_p0 = scmp.lt.u32.totalorder %s1069_s1, %s1323_s10 }
 0x6a0   :  { %p1075_p1 = pnand %p1073_p0, %p1070_p13 }
 0x6a2   :  { %1078 = shalt.err (!%p1075_p1)
}
 0x6a3   :  { %705 = dma.vmem_to_hbm [thread:$0]  %s703_s12, 16, %s1323_s10, [#allocation5]  }
 0x6a4   :  { %1081 = dma.done.wait [#allocation5], 16  }
 0x6a5   :  { %1082 = vsyncadd [#allocation5], 4294967280 }
 0x6a6   :  { %709 = vsyncpa [#allocation4], 1 }
 0x6a7   :  { %710 = vsyncpa [#allocation5], 1 }

</bundles_post_ra>
